<compile_context>
chip_gen: v7x
topology: tpu7x:2x2x1
jax: 0.10.0
libtpu: 0.0.40
codegen_flags: <defaults>
</compile_context>

<pallas_src>
import jax
import jax.numpy as jnp
from jax.experimental import pallas as pl
from jax.experimental.pallas import tpu as pltpu

LANES = 128
MAX_ROW_TILE = 2048  # rows of the [rows, 128] slab per grid step (8/16/32-aligned)


def _make_threshold_mask_kernel(slope):
    """Elementwise kernel with slope baked in as a compile-time constant."""
    slope_f = float(slope)

    def kernel(x_ref, t_ref, o_ref):
        # Stream native dtype through HBM; do the math in f32 (PyTorch parity).
        x = x_ref[...].astype(jnp.float32)
        t = t_ref[...].astype(jnp.float32)
        z = slope_f * (x - t)
        # Numerically-stable exact sigmoid:
        #   p = 1 / (1 + exp(-|z|));  sigmoid(z) = p if z >= 0 else 1 - p
        # exp never overflows and the divide is exact (EUP/VPU slack is huge,
        # everything hides under the DMA stream).
        p = 1.0 / (1.0 + jnp.exp(-jnp.abs(z)))
        o_ref[...] = jnp.where(z >= 0, p, 1.0 - p).astype(o_ref.dtype)

    return kernel


def threshold_random_mask(inputs, thresh, slope=200.0):
    """sigmoid(slope * (inputs - thresh)) via a Pallas TPU streaming kernel."""
    assert inputs.shape == thresh.shape, "inputs and thresh must match (elementwise)"
    orig_shape = inputs.shape
    dtype = inputs.dtype
    itemsize = jnp.dtype(dtype).itemsize

    x = inputs.reshape(-1)
    t = thresh.reshape(-1)
    n = x.size

    # Kernel covers the 128-lane-aligned prefix; partial last *blocks* along the
    # row axis are handled by Pallas masking, so no padding is ever needed.
    n_main = (n // LANES) * LANES

    pieces = []
    if n_main:
        rows = n_main // LANES
        x2 = x[:n_main].reshape(rows, LANES)
        t2 = t[:n_main].reshape(rows, LANES)

        # Single block when it fits (the grid is a serial loop on 1-TC chips);
        # otherwise 1 MiB/stream tiles amortize the ~0.35 us per-step cost and
        # the "parallel" axis shards across both TensorCores on v7x.
        # Full-extent blocks are always legal; tiled blocks (2048 rows) satisfy
        # the (8,128) rule for f32/bf16/int8 packing alike.
        row_tile = rows if rows <= MAX_ROW_TILE else MAX_ROW_TILE
        grid = (pl.cdiv(rows, row_tile),)

        main = pl.pallas_call(
            _make_threshold_mask_kernel(slope),
            out_shape=jax.ShapeDtypeStruct((rows, LANES), dtype),
            grid_spec=pltpu.PrefetchScalarGridSpec(
                num_scalar_prefetch=0,
                grid=grid,
                in_specs=[
                    pl.BlockSpec((row_tile, LANES), lambda i: (i, 0)),  # inputs
                    pl.BlockSpec((row_tile, LANES), lambda i: (i, 0)),  # thresh
                ],
                out_specs=pl.BlockSpec((row_tile, LANES), lambda i: (i, 0)),
            ),
            compiler_params=pltpu.CompilerParams(
                dimension_semantics=("parallel",),
            ),
            cost_estimate=pl.CostEstimate(
                flops=5 * n_main,
                transcendentals=n_main,
                bytes_accessed=3 * n_main * itemsize,
            ),
        )(x2, t2)
        pieces.append(main.reshape(-1))

    if n_main < n:
        # <128-element tail (or arrays smaller than one lane row): plain jnp.
        zt = float(slope) * (
            x[n_main:].astype(jnp.float32) - t[n_main:].astype(jnp.float32)
        )
        pieces.append(jax.nn.sigmoid(zt).astype(dtype))

    out_flat = pieces[0] if len(pieces) == 1 else jnp.concatenate(pieces)
    return out_flat.reshape(orig_shape)


if __name__ == "__main__":
    key = jax.random.PRNGKey(0)
    k1, k2, k3, k4, k5, k6 = jax.random.split(key, 6)
    slope = 200.0  # matches nn.Parameter(torch.tensor(200.), requires_grad=False)

    # Primary small NCHW case (f32, lane-aligned, single block, grid=(1,)).
    B, C, H, W = 2, 4, 16, 16
    x = jax.random.uniform(k1, (B, C, H, W), dtype=jnp.float32)
    th = jax.random.uniform(k2, (B, C, H, W), dtype=jnp.float32)
    out = jax.block_until_ready(threshold_random_mask(x, th, slope))
    ref = jax.nn.sigmoid(slope * (x - th))
    assert out.shape == ref.shape and out.dtype == jnp.float32
    assert float(jnp.max(jnp.abs(out - ref))) < 1e-5

    # Unaligned element count (3*1*20*20 = 1200 = 9*128 + 48):
    # exercises the prefix-kernel + tiny-jnp-tail path (no pad, no slice).
    x2 = jax.random.uniform(k3, (3, 1, 20, 20), dtype=jnp.float32)
    t2 = jax.random.uniform(k4, (3, 1, 20, 20), dtype=jnp.float32)
    out2 = jax.block_until_ready(threshold_random_mask(x2, t2, slope))
    ref2 = jax.nn.sigmoid(slope * (x2 - t2))
    assert out2.shape == x2.shape
    assert float(jnp.max(jnp.abs(out2 - ref2))) < 1e-5

    # Native bf16 I/O path (math still in f32 inside the kernel).
    xb = jax.random.uniform(k5, (B, C, H, W), dtype=jnp.float32).astype(jnp.bfloat16)
    tb = jax.random.uniform(k6, (B, C, H, W), dtype=jnp.float32).astype(jnp.bfloat16)
    out3 = jax.block_until_ready(threshold_random_mask(xb, tb, slope))
    ref3 = jax.nn.sigmoid(slope * (xb.astype(jnp.float32) - tb.astype(jnp.float32)))
    assert out3.dtype == jnp.bfloat16
    assert float(jnp.max(jnp.abs(out3.astype(jnp.float32) - ref3))) < 1e-2

    print("KERNEL_OK")
</pallas_src>

<mosaic_0001>
module attributes {stable_mosaic.version = 11 : i64} {
  func.func @kernel(%arg0: i32, %arg1: memref<16x128xf32, #tpu.memory_space<vmem>>, %arg2: memref<16x128xf32, #tpu.memory_space<vmem>>, %arg3: memref<16x128xf32, #tpu.memory_space<vmem>>) attributes {dimension_semantics = [#tpu.dimension_semantics<parallel>], iteration_bounds = array<i64: 1>, scalar_prefetch = 0 : i64, scratch_operands = 0 : i64, tpu.core_type = #tpu.core_type<tc>, window_params = [{transform_indices = @transform_0, window_bounds = array<i64: 16, 128>}, {transform_indices = @transform_1, window_bounds = array<i64: 16, 128>}, {transform_indices = @transform_2, window_bounds = array<i64: 16, 128>}]} {
    %c0 = arith.constant 0 : index
    %c0_0 = arith.constant 0 : index
    %0 = vector.load %arg1[%c0, %c0_0] : memref<16x128xf32, #tpu.memory_space<vmem>>, vector<16x128xf32>
    %c0_1 = arith.constant 0 : index
    %c0_2 = arith.constant 0 : index
    %1 = vector.load %arg2[%c0_1, %c0_2] : memref<16x128xf32, #tpu.memory_space<vmem>>, vector<16x128xf32>
    %2 = arith.subf %0, %1 : vector<16x128xf32>
    %cst = arith.constant 2.000000e+02 : f32
    %3 = vector.broadcast %cst : f32 to vector<16x128xf32>
    %4 = arith.mulf %3, %2 : vector<16x128xf32>
    %5 = math.absf %4 : vector<16x128xf32>
    %cst_3 = arith.constant 0.000000e+00 : f32
    %6 = vector.broadcast %cst_3 : f32 to vector<16x128xf32>
    %7 = arith.subf %6, %5 : vector<16x128xf32>
    %8 = math.exp %7 : vector<16x128xf32>
    %cst_4 = arith.constant 1.000000e+00 : f32
    %9 = vector.broadcast %cst_4 : f32 to vector<16x128xf32>
    %10 = arith.addf %9, %8 : vector<16x128xf32>
    %cst_5 = arith.constant 1.000000e+00 : f32
    %11 = vector.broadcast %cst_5 : f32 to vector<16x128xf32>
    %12 = arith.divf %11, %10 : vector<16x128xf32>
    %cst_6 = arith.constant 0.000000e+00 : f32
    %13 = vector.broadcast %cst_6 : f32 to vector<16x128xf32>
    %14 = arith.cmpf oge, %4, %13 : vector<16x128xf32>
    %cst_7 = arith.constant 1.000000e+00 : f32
    %15 = vector.broadcast %cst_7 : f32 to vector<16x128xf32>
    %16 = arith.subf %15, %12 : vector<16x128xf32>
    %17 = arith.select %14, %12, %16 : vector<16x128xi1>, vector<16x128xf32>
    %c0_8 = arith.constant 0 : index
    %c0_9 = arith.constant 0 : index
    %18 = vector.load %arg3[%c0_8, %c0_9] : memref<16x128xf32, #tpu.memory_space<vmem>>, vector<16x128xf32>
    tpu.vector_store %arg3[%c0_8, %c0_9], %17 {strides = array<i32>} : memref<16x128xf32, #tpu.memory_space<vmem>>, vector<16x128xf32>,
    return
  }
  func.func @transform_0(%arg0: i32) -> (i32, i32) {
    %c0_i32 = arith.constant 0 : i32
    %c0_i32_0 = arith.constant 0 : i32
    return %arg0, %c0_i32 : i32, i32
  }
  func.func @transform_1(%arg0: i32) -> (i32, i32) {
    %c0_i32 = arith.constant 0 : i32
    %c0_i32_0 = arith.constant 0 : i32
    return %arg0, %c0_i32 : i32, i32
  }
  func.func @transform_2(%arg0: i32) -> (i32, i32) {
    %c0_i32 = arith.constant 0 : i32
    %c0_i32_0 = arith.constant 0 : i32
    return %arg0, %c0_i32 : i32, i32
  }
}

</mosaic_0001>

<bundles_post_ra>
// kernel: tpu_custom_call.1
= control target key start
LH: loop header
LB: loop body
LE: loop exit
PB: predicated region body
PF: predicated region fallthrough
CT: control target
= control target key end

     0   :  { %7 = vsyncpa [#allocation3], 0  ;;  %s238_s0 = inlined_call_operand.hbm [shape: f32[16,128], index: 0, kind: input, shape index: {}]   ;;  %s239_s1 = inlined_call_operand.hbm [shape: f32[16,128], index: 1, kind: input, shape index: {}]   ;;  %s240_s2 = inlined_call_operand.hbm [shape: f32[16,128], index: 2, kind: output, shape index: {}]  }
   0x1   :  { %8 = vsyncpa [#allocation6], 0 }
   0x2   :  { %9 = vsyncpa [#allocation4], 0  ;;  %s173_s9 = smov [#allocation2]   ;;  %s101_s13 = scalar_lea.hbm %s238_s0, 256 }
   0x3   :  { %s15_s10 = sshll.u32 %s173_s9, 4  ;;  %p102_p0 = scmp.ne.s32.totalorder %s238_s0, %s101_s13  ;;  %s16_s10 = int_to_ptr.vmem [resolvable:$true] %s15_s10 }
   0x4   :  { %p105_p1 = scmp.lt.u32.totalorder %s101_s13, %s238_s0 }
   0x6   :  { %p107_p2 = pnand %p105_p1, %p102_p0 }
   0x8   :  { %110 = shalt.err (!%p107_p2)
}
   0x9   :  { %s111_s18 = scalar_lea.vmem %s16_s10, 256  ;;  %p116_p4 = scmp.lt.s32.totalorder %s16_s10, %s16_s10 }
   0xa   :  { %p112_p3 = scmp.ne.s32.totalorder %s16_s10, %s111_s18  ;;  %p117_p5 = scmp.lt.s32.totalorder %s111_s18, %s111_s18 }
   0xc   :  { %p118_p6 = por %p117_p5, %p116_p4 }
   0xe   :  { %p119_p7 = pnand %p118_p6, %p112_p3 }
  0x10   :  { %122 = shalt.err (!%p119_p7)
}
  0x11   :  { %s174_s19 = smov 128   ;;  %s175_s20 = smov 8  }
  0x12   :  { %21 = dma.hbm_to_vmem [thread:$0]  %s238_s0, 256, %s16_s10, [#allocation3], %s174_s19, %s174_s19, %s175_s20  }
  0x13   :  { %s176_s23 = smov [#allocation5]   ;;  %s123_s27 = scalar_lea.hbm %s239_s1, 256 }
  0x14   :  { %s27_s24 = sshll.u32 %s176_s23, 4  ;;  %p124_p8 = scmp.ne.s32.totalorder %s239_s1, %s123_s27  ;;  %s28_s24 = int_to_ptr.vmem [resolvable:$true] %s27_s24 }
  0x15   :  { %p127_p9 = scmp.lt.u32.totalorder %s123_s27, %s239_s1 }
  0x17   :  { %p129_p10 = pnand %p127_p9, %p124_p8 }
  0x19   :  { %132 = shalt.err (!%p129_p10)
}
  0x1a   :  { %s133_s4 = scalar_lea.vmem %s28_s24, 256  ;;  %p138_p12 = scmp.lt.s32.totalorder %s28_s24, %s28_s24 }
  0x1b   :  { %p134_p11 = scmp.ne.s32.totalorder %s28_s24, %s133_s4  ;;  %p139_p13 = scmp.lt.s32.totalorder %s133_s4, %s133_s4 }
  0x1d   :  { %p140_p0 = por %p139_p13, %p138_p12 }
  0x1f   :  { %p141_p1 = pnand %p140_p0, %p134_p11 }
  0x21   :  { %144 = shalt.err (!%p141_p1)
}
  0x22   :  { %33 = dma.hbm_to_vmem [thread:$0]  %s239_s1, 256, %s28_s24, [#allocation6], %s174_s19, %s174_s19, %s175_s20  }
  0x23   :  { %167 = dma.done.wait [#allocation3], 256  }
  0x24   :  { %168 = vsyncadd [#allocation3], 4294967040 }
  0x25   :  { %169 = dma.done.wait [#allocation6], 256  }
  0x26   :  { %170 = vsyncadd [#allocation6], 4294967040  ;;  %v40_v0 = vld [vmem:[#allocation2] sm:$0xff]  ;;  %v42_v1 = vld [vmem:[#allocation5] sm:$0xff]  ;;  %s177_s1 = smov [#allocation7]  }
  0x27   :  { %v41_v2 = vld [vmem:[#allocation2 + $0x8] sm:$0xff]  ;;  %v44_v3 = vsub.f32 %v40_v0, %v42_v1  ;;  %v43_v4 = vld [vmem:[#allocation5 + $0x8] sm:$0xff]  ;;  %s75_s6 = sshll.u32 %s177_s1, 4  ;;  %s76_s6 = int_to_ptr.vmem [resolvable:$true] %s75_s6 }
  0x28   :  { %v45_v5 = vsub.f32 %v41_v2, %v43_v4  ;;  %s145_s7 = scalar_lea.vmem %s76_s6, 256  ;;  %p150_p3 = scmp.lt.s32.totalorder %s76_s6, %s76_s6 }
  0x29   :  { %v46_v6 = vmul.f32 200.0, %v44_v3  ;;  %p146_p2 = scmp.ne.s32.totalorder %s76_s6, %s145_s7  ;;  %p151_p4 = scmp.lt.s32.totalorder %s145_s7, %s145_s7 }
  0x2a   :  { %v47_v7 = vmul.f32 200.0, %v45_v5 }
  0x2b   :  { %v48_v8 = vand.u32 2147483647, %v46_v6  ;;  %vm62_vm0 = vcmp.ge.f32.partialorder %v46_v6, 0.0  ;;  %p152_p5 = por %p151_p4, %p150_p3 }
  0x2c   :  { %v49_v9 = vand.u32 2147483647, %v47_v7  ;;  %vm63_vm1 = vcmp.ge.f32.partialorder %v47_v7, 0.0 }
  0x2d   :  { %v50_v10 = vsub.f32 0.0, %v48_v8  ;;  %p153_p6 = pnand %p152_p5, %p146_p2 }
  0x2e   :  { %v51_v11 = vsub.f32 0.0, %v49_v9 }
  0x2f   :  { %v52_v12 = vmul.f32 1.442695, %v50_v10 }
  0x30   :  { %v54_v13 = vmul.f32 1.442695, %v51_v11 }
  0x31   :  { %93 = vpow2.f32 %v52_v12 }
  0x32   :  { %95 = vpow2.f32 %v54_v13 }
  0x3b   :  { %v94_v14 = vpop.eup %93 }
  0x3c   :  { %v96_v15 = vpop.eup %95  ;;  %v56_v16 = vadd.f32 1.0, %v94_v14 }
  0x3d   :  { %v57_v17 = vadd.f32 1.0, %v96_v15 }
  0x3e   :  { %97 = vrcp.f32 %v56_v16 }
  0x3f   :  { %99 = vrcp.f32 %v57_v17 }
  0x48   :  { %v98_v18 = vpop.eup %97 }
  0x49   :  { %v100_v19 = vpop.eup %99  ;;  %v64_v20 = vsub.f32 1.0, %v98_v18 }
  0x4a   :  { %v65_v21 = vsub.f32 1.0, %v100_v19 }
  0x4b   :  { %v66_v22 = vsel %vm62_vm0, %v98_v18, %v64_v20 }
  0x4c   :  { %68 = vst [vmem:[#allocation7] sm:$0xff] %v66_v22  ;;  %v67_v23 = vsel %vm63_vm1, %v100_v19, %v65_v21 }
  0x4d   :  { %69 = vst [vmem:[#allocation7 + $0x8] sm:$0xff] %v67_v23 }
  0x4e   :  { %156 = shalt.err (!%p153_p6)
}
  0x4f   :  { %s157_s10 = scalar_lea.hbm %s240_s2, 256 }
  0x50   :  { %p158_p7 = scmp.ne.s32.totalorder %s240_s2, %s157_s10  ;;  %p161_p8 = scmp.lt.u32.totalorder %s157_s10, %s240_s2 }
  0x52   :  { %p163_p9 = pnand %p161_p8, %p158_p7 }
  0x54   :  { %166 = shalt.err (!%p163_p9)
}
  0x55   :  { %81 = dma.vmem_to_hbm [thread:$0]  %s76_s6, 256, %s240_s2, [#allocation4], %s174_s19, %s174_s19, %s175_s20  }
  0x56   :  { %171 = dma.done.wait [#allocation4], 256  }
  0x57   :  { %172 = vsyncadd [#allocation4], 4294967040 }
  0x58   :  { %85 = vsyncpa [#allocation3], 1 }
  0x59   :  { %86 = vsyncpa [#allocation6], 1 }
  0x5a   :  { %87 = vsyncpa [#allocation4], 1 }

</bundles_post_ra>
